<compile_context>
chip_gen: v6e
topology: v6e:2x2x1
jax: 0.10.0
libtpu: 0.0.40
codegen_flags: <defaults>
</compile_context>

<pallas_src>
import functools

import jax
import jax.numpy as jnp
import numpy as np
from jax import lax
from jax.experimental import pallas as pl
from jax.experimental.pallas import tpu as pltpu

T_ITERS = 5
EPS = 1e-5
MOMENTUM = 0.2

# Pass-2 double-buffered working-set budget (2 in + 2 out row tiles) and the
# scoped-VMEM limit requested from the compiler.  16 MiB + 32 MiB is safe on
# v5e (128 MiB phys / 16 MiB default scope), v6e (128/32) and v7x (64/32).
_WORKING_SET_BUDGET = 16 * 1024 * 1024
_VMEM_LIMIT_BYTES = 32 * 1024 * 1024


def _round_up(v, m):
    return ((v + m - 1) // m) * m


def _reduce_kernel(x_ref, psum_ref, pgram_ref, *, tile_n, steps_per_split,
                   n_samples):
    """Pass 1: per-core-split partial sum(x) and gram = X^T X over row tiles."""
    s = pl.program_id(0)          # core-split index ("parallel")
    i = pl.program_id(1)          # step within the split ("arbitrary")

    @pl.when(i == 0)
    def _init():
        psum_ref[...] = jnp.zeros(psum_ref.shape, psum_ref.dtype)
        pgram_ref[...] = jnp.zeros(pgram_ref.shape, pgram_ref.dtype)

    # Unclamped global row-tile index (the index_map clamps the DMA; here we
    # mask so ragged / duplicated tiles contribute exactly zero).
    blk = s * steps_per_split + i
    x = x_ref[...]                                           # (tile_n, C) f32
    rows = blk * tile_n + lax.broadcasted_iota(jnp.int32, x.shape, 0)
    xm = jnp.where(rows < n_samples, x, 0.0)

    # gram += X_tile^T X_tile  (contract the row / sublane axis).
    pgram_ref[0] += lax.dot_general(
        xm, xm, (((0,), (0,)), ((), ())), preferred_element_type=jnp.float32)
    psum_ref[0] += jnp.sum(xm, axis=0, keepdims=True)        # (1, C)


def _finalize_kernel(psum_ref, pgram_ref, rmean_ref, rwm_ref, rrot_ref,
                     m_ref, bias_ref, nmean_ref, nwm_ref,
                     *, T, eps, momentum, n_samples):
    """One-time C x C finalize: Sigma, Newton-Schulz, buffers, fused apply M."""
    c = m_ref.shape[0]
    inv_m = 1.0 / n_samples

    mean_row = jnp.sum(psum_ref[...], axis=0) * inv_m        # (1, C)
    gram = jnp.sum(pgram_ref[...], axis=0)                   # (C, C)

    row = lax.broadcasted_iota(jnp.int32, (c, c), 0)
    col = lax.broadcasted_iota(jnp.int32, (c, c), 1)
    eye = (row == col).astype(jnp.float32)

    # mean as a column (via eye @ mean_row^T) so the outer product below uses
    # the plain A @ B^T matmul pattern.
    mean_col = lax.dot_general(eye, mean_row, (((1,), (1,)), ((), ())),
                               preferred_element_type=jnp.float32)   # (C, 1)

    # Sigma = eps*I + (1/m) xc xc^T == eps*I + gram/m - mean mean^T.
    # NOTE: single-pass (uncentred) formulation -- cancellation-prone when
    # |mean| >> std; acceptable for roughly-normalised activations.
    mmt = lax.dot_general(mean_col, mean_col, (((1,), (1,)), ((), ())),
                          preferred_element_type=jnp.float32)        # (C, C)
    sigma = eps * eye + gram * inv_m - mmt

    trace = jnp.sum(sigma * eye, keepdims=True)              # (1, 1)
    r_tr = 1.0 / trace                                       # exact (runs once)
    sigma_n = sigma * r_tr

    # Newton-Schulz: P_{k+1} = 1.5 P_k - 0.5 P_k^3 Sigma_N, P_0 = I.
    p = eye
    for _ in range(T):
        p3 = jnp.dot(jnp.dot(p, p, preferred_element_type=jnp.float32), p,
                     preferred_element_type=jnp.float32)
        p = 1.5 * p - 0.5 * jnp.dot(p3, sigma_n,
                                    preferred_element_type=jnp.float32)
    wm = p * jnp.sqrt(r_tr)

    # Running-buffer momentum updates (training=True); returned functionally.
    nmean_ref[...] = momentum * mean_row + (1.0 - momentum) * rmean_ref[...]
    nwm_ref[...] = momentum * wm + (1.0 - momentum) * rwm_ref[...]

    # Fused apply: y_row = x_row @ M^T - bias_row, with M = rot @ wm and
    # bias_row = (M @ mean)^T = mean_row @ M^T.
    m_mat = jnp.dot(rrot_ref[...], wm, preferred_element_type=jnp.float32)
    m_ref[...] = m_mat
    bias_ref[...] = lax.dot_general(mean_row, m_mat, (((1,), (1,)), ((), ())),
                                    preferred_element_type=jnp.float32)


def _apply_kernel(m_ref, bias_ref, x_ref, y_ref):
    """Pass 2: one fused MXU matmul per row tile, native (N, C) output."""
    y = lax.dot_general(x_ref[...], m_ref[...], (((1,), (1,)), ((), ())),
                        preferred_element_type=jnp.float32)  # x @ M^T
    y_ref[...] = (y - bias_ref[...]).astype(y_ref.dtype)


def iter_norm_rotation_forward(x, running_mean, running_wm, running_rot, *,
                               T=T_ITERS, eps=EPS, momentum=MOMENTUM,
                               tile_n=8192, num_core_splits=2):
    """IterNormRotation.forward with mode=-1, affine=False, training=True.

    x:            (N, C) float32 (sample-major, num_groups == 1)
    running_mean: (1, C, 1) float32
    running_wm:   (1, C, C) float32
    running_rot:  (1, C, C) float32
    Returns (y (N, C), new_running_mean (1, C, 1), new_running_wm (1, C, C)).
    """
    n, c = x.shape
    x = x.astype(jnp.float32)
    rmean = running_mean.reshape(1, c).astype(jnp.float32)   # metadata reshape
    rwm = running_wm.reshape(c, c).astype(jnp.float32)
    rrot = running_rot.reshape(c, c).astype(jnp.float32)

    # ---- tile sizing: biggest row tile whose pass-2 double-buffered working
    # set (2 in + 2 out tiles, lanes padded to 128) fits the VMEM budget.
    c_lanes = _round_up(c, 128)
    max_tile = max(8, (_WORKING_SET_BUDGET // (16 * c_lanes)) // 8 * 8)
    tile_n = min(tile_n, max_tile)
    if n >= 8:
        tile_n = max(8, min(tile_n, n) // 8 * 8)
    else:
        tile_n = n
    grid_n = -(-n // tile_n)

    num_splits = num_core_splits if grid_n >= num_core_splits else 1
    steps = -(-grid_n // num_splits)

    # ---- pass 1: partial sum / gram per core split --------------------------
    reduce_kernel = functools.partial(
        _reduce_kernel, tile_n=tile_n, steps_per_split=steps, n_samples=n)
    psum, pgram = pl.pallas_call(
        reduce_kernel,
        out_shape=(
            jax.ShapeDtypeStruct((num_splits, 1, c), jnp.float32),
            jax.ShapeDtypeStruct((num_splits, c, c), jnp.float32),
        ),
        grid_spec=pltpu.PrefetchScalarGridSpec(
            num_scalar_prefetch=0,
            grid=(num_splits, steps),
            in_specs=[
                pl.BlockSpec(
                    (tile_n, c),
                    lambda s, i: (jnp.minimum(s * steps + i, grid_n - 1), 0)),
            ],
            out_specs=(
                pl.BlockSpec((1, 1, c), lambda s, i: (s, 0, 0)),
                pl.BlockSpec((1, c, c), lambda s, i: (s, 0, 0)),
            )),
        compiler_params=pltpu.CompilerParams(
            dimension_semantics=("parallel", "arbitrary"),
            vmem_limit_bytes=_VMEM_LIMIT_BYTES),
    )(x)

    # ---- finalize: one-time C x C stats / Newton-Schulz / fused M, bias -----
    finalize_kernel = functools.partial(
        _finalize_kernel, T=T, eps=eps, momentum=momentum, n_samples=n)
    m_mat, bias, nmean, nwm = pl.pallas_call(
        finalize_kernel,
        out_shape=(
            jax.ShapeDtypeStruct((c, c), jnp.float32),   # M = rot @ wm
            jax.ShapeDtypeStruct((1, c), jnp.float32),   # bias_row
            jax.ShapeDtypeStruct((1, c), jnp.float32),   # new running_mean
            jax.ShapeDtypeStruct((c, c), jnp.float32),   # new running_wm
        ),
        grid_spec=pltpu.PrefetchScalarGridSpec(
            num_scalar_prefetch=0,
            grid=(1,),
            in_specs=[
                pl.BlockSpec((num_splits, 1, c), lambda i: (0, 0, 0)),
                pl.BlockSpec((num_splits, c, c), lambda i: (0, 0, 0)),
                pl.BlockSpec((1, c), lambda i: (0, 0)),
                pl.BlockSpec((c, c), lambda i: (0, 0)),
                pl.BlockSpec((c, c), lambda i: (0, 0)),
            ],
            out_specs=(
                pl.BlockSpec((c, c), lambda i: (0, 0)),
                pl.BlockSpec((1, c), lambda i: (0, 0)),
                pl.BlockSpec((1, c), lambda i: (0, 0)),
                pl.BlockSpec((c, c), lambda i: (0, 0)),
            )),
        compiler_params=pltpu.CompilerParams(
            dimension_semantics=("arbitrary",),
            vmem_limit_bytes=_VMEM_LIMIT_BYTES),
    )(psum, pgram, rmean, rwm, rrot)

    # ---- pass 2: fused apply, native (N, C) output, parallel over row tiles -
    y = pl.pallas_call(
        _apply_kernel,
        out_shape=jax.ShapeDtypeStruct((n, c), jnp.float32),
        grid_spec=pltpu.PrefetchScalarGridSpec(
            num_scalar_prefetch=0,
            grid=(grid_n,),
            in_specs=[
                pl.BlockSpec((c, c), lambda i: (0, 0)),
                pl.BlockSpec((1, c), lambda i: (0, 0)),
                pl.BlockSpec((tile_n, c), lambda i: (i, 0)),
            ],
            out_specs=pl.BlockSpec((tile_n, c), lambda i: (i, 0))),
        compiler_params=pltpu.CompilerParams(
            dimension_semantics=("parallel",),
            vmem_limit_bytes=_VMEM_LIMIT_BYTES),
    )(m_mat, bias, x)

    return y, nmean.reshape(1, c, 1), nwm.reshape(1, c, c)


def _reference(x, running_mean, running_wm, running_rot, T, eps, momentum):
    """Pure-JAX mirror of the torch forward (channel-major, like torch)."""
    n, c = x.shape
    hp = lax.Precision.HIGHEST
    xcm = x.T.astype(jnp.float32)                       # (C, N)
    mean = xcm.mean(axis=1, keepdims=True)              # (C, 1)
    xc = xcm - mean
    eye = jnp.eye(c, dtype=jnp.float32)
    sigma = eps * eye + jnp.matmul(xc, xc.T, precision=hp) / n
    r_tr = 1.0 / jnp.trace(sigma)
    sigma_n = sigma * r_tr
    p = eye
    for _ in range(T):
        p3 = jnp.matmul(jnp.matmul(p, p, precision=hp), p, precision=hp)
        p = 1.5 * p - 0.5 * jnp.matmul(p3, sigma_n, precision=hp)
    wm = p * jnp.sqrt(r_tr)
    new_mean = momentum * mean + (1.0 - momentum) * running_mean[0]
    new_wm = momentum * wm + (1.0 - momentum) * running_wm[0]
    xn = jnp.matmul(wm, xc, precision=hp)               # (C, N)
    y = jnp.einsum('bc,dc->bd', xn.T, running_rot[0], precision=hp)
    return y, new_mean[None], new_wm[None]


if __name__ == "__main__":
    # num_features = num_channels = 32 (num_groups = 1), N = 300 samples/nodes
    # (not a multiple of the tile: exercises the ragged-tile mask, the
    # two-way core split of pass 1 and the partial output store of pass 2).
    N, C = 300, 32
    key = jax.random.PRNGKey(0)
    x = jax.random.normal(key, (N, C), dtype=jnp.float32)

    # deterministic buffer init, matching the module's register_buffer values
    running_mean = jnp.zeros((1, C, 1), dtype=jnp.float32)
    running_wm = jnp.eye(C, dtype=jnp.float32)[None]
    running_rot = jnp.eye(C, dtype=jnp.float32)[None]

    y, nmean, nwm = iter_norm_rotation_forward(
        x, running_mean, running_wm, running_rot)
    jax.block_until_ready((y, nmean, nwm))

    y_ref, nmean_ref, nwm_ref = _reference(
        x, running_mean, running_wm, running_rot, T_ITERS, EPS, MOMENTUM)
    np.testing.assert_allclose(np.asarray(y), np.asarray(y_ref),
                               rtol=2e-3, atol=2e-3)
    np.testing.assert_allclose(np.asarray(nmean).reshape(-1),
                               np.asarray(nmean_ref).reshape(-1),
                               rtol=2e-3, atol=2e-3)
    np.testing.assert_allclose(np.asarray(nwm), np.asarray(nwm_ref),
                               rtol=2e-3, atol=2e-3)
    print("KERNEL_OK")
</pallas_src>

<mosaic_0001>
module attributes {stable_mosaic.version = 11 : i64} {
  func.func @_reduce_kernel(%arg0: i32, %arg1: i32, %arg2: memref<296x32xf32, #tpu.memory_space<vmem>>, %arg3: memref<1x1x32xf32, #tpu.memory_space<vmem>>, %arg4: memref<1x32x32xf32, #tpu.memory_space<vmem>>) attributes {dimension_semantics = [#tpu.dimension_semantics<parallel>, #tpu.dimension_semantics<arbitrary>], iteration_bounds = array<i64: 2, 1>, scalar_prefetch = 0 : i64, scratch_operands = 0 : i64, tpu.core_type = #tpu.core_type<tc>, window_params = [{transform_indices = @transform_0, window_bounds = array<i64: 296, 32>}, {transform_indices = @transform_1, window_bounds = array<i64: 1, 1, 32>}, {transform_indices = @transform_2, window_bounds = array<i64: 1, 32, 32>}]} {
    %c0_i32 = arith.constant 0 : i32
    %0 = arith.cmpi eq, %arg1, %c0_i32 : i32
    %1 = arith.extui %0 : i1 to i32
    %c0_i32_0 = arith.constant 0 : i32
    %2 = arith.cmpi ne, %1, %c0_i32_0 : i32
    scf.if %2 {
      %cst_16 = arith.constant 0.000000e+00 : f32
      %29 = vector.broadcast %cst_16 : f32 to vector<1x1x32xf32>
      %c0_17 = arith.constant 0 : index
      %c0_18 = arith.constant 0 : index
      %c0_19 = arith.constant 0 : index
      %30 = vector.load %arg3[%c0_17, %c0_18, %c0_19] : memref<1x1x32xf32, #tpu.memory_space<vmem>>, vector<1x1x32xf32>
      tpu.vector_store %arg3[%c0_17, %c0_18, %c0_19], %29 {strides = array<i32>} : memref<1x1x32xf32, #tpu.memory_space<vmem>>, vector<1x1x32xf32>,
      %cst_20 = arith.constant 0.000000e+00 : f32
      %31 = vector.broadcast %cst_20 : f32 to vector<1x32x32xf32>
      %c0_21 = arith.constant 0 : index
      %c0_22 = arith.constant 0 : index
      %c0_23 = arith.constant 0 : index
      %32 = vector.load %arg4[%c0_21, %c0_22, %c0_23] : memref<1x32x32xf32, #tpu.memory_space<vmem>>, vector<1x32x32xf32>
      tpu.vector_store %arg4[%c0_21, %c0_22, %c0_23], %31 {strides = array<i32>} : memref<1x32x32xf32, #tpu.memory_space<vmem>>, vector<1x32x32xf32>,
    } else {
    }
    %c1_i32 = arith.constant 1 : i32
    %3 = arith.muli %arg0, %c1_i32 : i32
    %4 = arith.addi %3, %arg1 : i32
    %c0 = arith.constant 0 : index
    %c0_1 = arith.constant 0 : index
    %5 = vector.load %arg2[%c0, %c0_1] : memref<296x32xf32, #tpu.memory_space<vmem>>, vector<296x32xf32>
    %c296_i32 = arith.constant 296 : i32
    %6 = arith.muli %4, %c296_i32 : i32
    %7 = tpu.iota {dimensions = array<i32: 0>} : vector<296x32xi32>
    %8 = vector.broadcast %6 : i32 to vector<296x32xi32>
    %9 = arith.addi %8, %7 : vector<296x32xi32>
    %c300_i32 = arith.constant 300 : i32
    %10 = vector.broadcast %c300_i32 : i32 to vector<296x32xi32>
    %11 = arith.cmpi slt, %9, %10 : vector<296x32xi32>
    %cst = arith.constant 0.000000e+00 : f32
    %12 = vector.broadcast %cst : f32 to vector<296x32xf32>
    %13 = arith.select %11, %5, %12 : vector<296x32xi1>, vector<296x32xf32>
    %c0_2 = arith.constant 0 : index
    %c0_3 = arith.constant 0 : index
    %c0_4 = arith.constant 0 : index
    %14 = vector.load %arg4[%c0_2, %c0_3, %c0_4] : memref<1x32x32xf32, #tpu.memory_space<vmem>>, vector<1x32x32xf32>
    %15 = vector.shape_cast %14 : vector<1x32x32xf32> to vector<32x32xf32>
    %cst_5 = arith.constant dense<0.000000e+00> : vector<32x32xf32>
    %16 = tpu.matmul %13, %13, %cst_5 {dimension_numbers = #tpu.dot_dimension_numbers<[0], [0], [1], [1], [0, 1, 1, 1], [], []>} : vector<296x32xf32>, vector<296x32xf32>, vector<32x32xf32> -> vector<32x32xf32>
    %17 = arith.addf %15, %16 : vector<32x32xf32>
    %c0_6 = arith.constant 0 : index
    %c0_7 = arith.constant 0 : index
    %c0_8 = arith.constant 0 : index
    %18 = vector.load %arg4[%c0_6, %c0_7, %c0_8] : memref<1x32x32xf32, #tpu.memory_space<vmem>>, vector<1x32x32xf32>
    %19 = vector.shape_cast %18 : vector<1x32x32xf32> to vector<32x32xf32>
    %20 = vector.shape_cast %17 : vector<32x32xf32> to vector<1x32x32xf32>
    tpu.vector_store %arg4[%c0_6, %c0_7, %c0_8], %20 {strides = array<i32>} : memref<1x32x32xf32, #tpu.memory_space<vmem>>, vector<1x32x32xf32>,
    %c0_9 = arith.constant 0 : index
    %c0_10 = arith.constant 0 : index
    %c0_11 = arith.constant 0 : index
    %21 = vector.load %arg3[%c0_9, %c0_10, %c0_11] : memref<1x1x32xf32, #tpu.memory_space<vmem>>, vector<1x1x32xf32>
    %22 = vector.shape_cast %21 : vector<1x1x32xf32> to vector<1x32xf32>
    %cst_12 = arith.constant dense<0.000000e+00> : vector<32xf32>
    %23 = vector.multi_reduction <add>, %13, %cst_12 [0] : vector<296x32xf32> to vector<32xf32>
    %24 = vector.shape_cast %23 : vector<32xf32> to vector<1x32xf32>
    %25 = arith.addf %22, %24 : vector<1x32xf32>
    %c0_13 = arith.constant 0 : index
    %c0_14 = arith.constant 0 : index
    %c0_15 = arith.constant 0 : index
    %26 = vector.load %arg3[%c0_13, %c0_14, %c0_15] : memref<1x1x32xf32, #tpu.memory_space<vmem>>, vector<1x1x32xf32>
    %27 = vector.shape_cast %26 : vector<1x1x32xf32> to vector<1x32xf32>
    %28 = vector.shape_cast %25 : vector<1x32xf32> to vector<1x1x32xf32>
    tpu.vector_store %arg3[%c0_13, %c0_14, %c0_15], %28 {strides = array<i32>} : memref<1x1x32xf32, #tpu.memory_space<vmem>>, vector<1x1x32xf32>,
    return
  }
  func.func @transform_0(%arg0: i32, %arg1: i32) -> (i32, i32) {
    %c1_i32 = arith.constant 1 : i32
    %0 = arith.muli %arg0, %c1_i32 : i32
    %1 = arith.addi %0, %arg1 : i32
    %c1_i32_0 = arith.constant 1 : i32
    %2 = arith.minsi %1, %c1_i32_0 : i32
    %c0_i32 = arith.constant 0 : i32
    %c0_i32_1 = arith.constant 0 : i32
    return %2, %c0_i32 : i32, i32
  }
  func.func @transform_1(%arg0: i32, %arg1: i32) -> (i32, i32, i32) {
    %c0_i32 = arith.constant 0 : i32
    %c0_i32_0 = arith.constant 0 : i32
    %c0_i32_1 = arith.constant 0 : i32
    return %arg0, %c0_i32, %c0_i32_0 : i32, i32, i32
  }
  func.func @transform_2(%arg0: i32, %arg1: i32) -> (i32, i32, i32) {
    %c0_i32 = arith.constant 0 : i32
    %c0_i32_0 = arith.constant 0 : i32
    %c0_i32_1 = arith.constant 0 : i32
    return %arg0, %c0_i32, %c0_i32_0 : i32, i32, i32
  }
}

</mosaic_0001>

<bundles_post_ra>
// kernel: tpu_custom_call.1
= control target key start
LH: loop header
LB: loop body
LE: loop exit
PB: predicated region body
PF: predicated region fallthrough
CT: control target
= control target key end

     0   :  { %8 = vsyncpa [#allocation3], 0  ;;  %s2051_s0 = inlined_call_operand.vmem [shape: f32[300,32], index: 0, kind: input, shape index: {}]   ;;  %s2052_s1 = inlined_call_operand.hbm [shape: f32[2,1,32], index: 1, kind: output, shape index: {0}]   ;;  %s2053_s2 = inlined_call_operand.hbm [shape: f32[2,32,32], index: 2, kind: output, shape index: {1}]  }
   0x1   :  { %10 = vsyncpa [#allocation3 + $0x1], 0 }
   0x2   :  { %11 = vsyncpa [#allocation5], 0 }
   0x3   :  { %13 = vsyncpa [#allocation5 + $0x1], 0  ;;  %s1278_s9 = smov 0   ;;  %s1280_s10 = smov 0  }
   0x4   :  { %s1282_s11 = smov 0   ;;  %s1284_s12 = smov 0  }
   0x5   :  { %s1286_s13 = smov 0   ;;  %s1288_s14 = smov 0  }
   0x6 LB: > { %s911_s15 = sadd.s32 4294967295, %s1256_s14   ;;  %s912_s16 = sadd.s32 4294967294, %s1256_s14   ;;  %s1256_s14 = sphi %s1288_s14, %s19_s14   ;;  %s1252_s13 = sphi %s1286_s13, %s2151_s13   ;;  %s1248_s12 = sphi %s1284_s12, %s2150_s12   ;;  %s1244_s11 = sphi %s1282_s11, %s2149_s11   ;;  %s1240_s10 = sphi %s1280_s10, %s2148_s10   ;;  %s1236_s9 = sphi %s1278_s9, %s2147_s9  }
   0x7   : > { %s31_s17 = sadd.s32 1, %s1252_s13  ;;  %s70_s18 = sadd.s32 1, %s1244_s11 }
   0x8   : > { %p33_p0 = scmp.ge.s32.totalorder %s31_s17, 2  ;;  %p80_p1 = scmp.ne.s32.totalorder %s1244_s11, %s1240_s10 }
   0x9   : > { %p81_p2 = scmp.eq.s32.totalorder %s911_s15, 1  ;;  %p86_p3 = scmp.ne.s32.totalorder %s1240_s10, %s1236_s9 }
   0xa   : > { %s2153_s17 = smov (%p33_p0, %s31_s17), 0  ;;  %p87_p5 = scmp.eq.s32.totalorder %s912_s16, 1 }
   0xb   : > { %p1318_p4 = por %p81_p2, %p80_p1  ;;  %s67_s20 = ssub.s32 %s1252_s13, %s2153_s17 }
   0xc   : > { %p915_p6 = scmp.ge.s32.totalorder %s1256_s14, 1  ;;  %p68_p7 = scmp.eq.s32.totalorder %s67_s20, 0 }
   0xd   : > { %p1325_p8 = por %p87_p5, %p86_p3  ;;  %p154_p9 = scmp.lt.s32.totalorder %s1256_s14, 3 }
   0xe   : > { %s1331_s22 = scalar_select %p68_p7, %s1244_s11, %s70_s18  }
   0xf   : > { %p155_p10 = pnand %p915_p6, %p154_p9 }
  0x11   : > { %158 = sbr.rel (%p155_p10) target bundleno = 411 (0x19b), region = 24 }
  0x16   : > { %p188_p11 = scmp.lt.s32.totalorder %s1248_s12, 1  ;;  %s256_s23 = smul.u32 296, %s1248_s12  ;;  %v257_v0 = vlaneseq  ;;  %vm213_vm2 = vcmask 261120  }
  0x17   : > { %s1948_s30 = sand.u32 1, %s1240_s10   ;;  %s960_s6 = sshll.u32 %s1248_s12, 4 }
  0x18   : > { %s189_s24 = scalar_select %p188_p11, %s1248_s12, 1  ;;  %v1336_v1 = vshrl.u32 %v257_v0, 7  ;;  %v1338_v2 = vstv %s256_s23 }
  0x19   : > { %s916_s3 = sshll.u32 %s1948_s30, 5  ;;  %s179_s5 = scalar_lea.vmem [#allocation2], %s1948_s30 }
  0x1a   : > { %s190_s25 = smul.u32 37, %s189_s24  ;;  %v274_v3 = vadd.s32 128, %v1336_v1  ;;  %v1343_v4 = vadd.s32 %v1338_v2, %v1336_v1  ;;  %v259_v11 = vadd.s32 8, %v1336_v1  ;;  %v260_v12 = vadd.s32 16, %v1336_v1  ;;  %s1951_s4 = scalar_lea.vmem [#allocation4], %s916_s3 }
  0x1b   : > { %v261_v13 = vadd.s32 24, %v1336_v1  ;;  %v262_v14 = vadd.s32 32, %v1336_v1  ;;  %v263_v15 = vadd.s32 40, %v1336_v1  ;;  %v264_v16 = vadd.s32 48, %v1336_v1  ;;  %s1966_s15 = scalar_lea.hbm %s2052_s1, %s960_s6  ;;  %s800_s16 = sshll.u32 %s179_s5, 4  ;;  %s801_s16 = int_to_ptr.vmem [resolvable:$true] %s800_s16 }
  0x1c   : > { %p195_p12 = scmp.lt.s32.totalorder %s190_s25, 37  ;;  %2092 = vst [vmem:[#allocation8_spill] sm:$0xff] %v1343_v4  ;;  %v1346_v5 = vadd.s32 %v1338_v2, %v274_v3  ;;  %vm2058_vm0 = vcmp.lt.s32.totalorder %v1343_v4, 300  ;;  %v265_v17 = vadd.s32 56, %v1336_v1  ;;  %v266_v18 = vadd.s32 64, %v1336_v1  ;;  %s783_s18 = scalar_lea.sflag [#allocation3], %s1948_s30 }
  0x1d   : > { %v267_v19 = vadd.s32 72, %v1336_v1  ;;  %v268_v20 = vadd.s32 80, %v1336_v1  ;;  %v269_v21 = vadd.s32 88, %v1336_v1  ;;  %v270_v22 = vadd.s32 96, %v1336_v1  ;;  %s1150_s20 = scalar_lea.vmem %s801_s16, 16  ;;  %s1259_s23 = smov [#allocation2]  }
  0x1e   : > { %s2155_s25 = smov (!%p195_p12, %s190_s25), 37  ;;  %vm2059_vm1 = vcmp.lt.s32.totalorder %v1346_v5, 300  ;;  %v271_v23 = vadd.s32 104, %v1336_v1  ;;  %v272_v24 = vadd.s32 112, %v1336_v1  ;;  %v273_v25 = vadd.s32 120, %v1336_v1  ;;  %p1151_p13 = scmp.ne.s32.totalorder %s801_s16, %s1150_s20 }
  0x1f   : > { %s917_s26 = sshll.u32 %s2155_s25, 3  ;;  %v275_v26 = vadd.s32 136, %v1336_v1  ;;  %v276_v27 = vadd.s32 144, %v1336_v1  ;;  %v277_v28 = vadd.s32 152, %v1336_v1  ;;  %v278_v29 = vadd.s32 160, %v1336_v1  ;;  %s1154_s24 = sshll.u32 %s1259_s23, 4  ;;  %s1155_s24 = int_to_ptr.vmem [resolvable:$false] %s1154_s24 }
  0x20   : > { %s1353_s29 = scalar_lea.vmem %s2051_s0, %s917_s26  ;;  %v289_v30 = vadd.s32 248, %v1336_v1  ;;  %v290_v31 = vadd.s32 256, %v1336_v1  ;;  %v279_v32 = vadd.s32 168, %v1336_v1  ;;  %v280_v33 = vadd.s32 176, %v1336_v1  ;;  %p1152_p0 = pnand %p1151_p13, %p1318_p4 }
  0x21   : > { %v1356_v6 = vld [vmem:[%s1353_s29] sm:$0xff]  ;;  %v281_v34 = vadd.s32 184, %v1336_v1  ;;  %v1395_v35 = vadd.s32 192, %v1336_v1  ;;  %v283_v36 = vadd.s32 200, %v1336_v1  ;;  %v284_v37 = vadd.s32 208, %v1336_v1  ;;  %v250_v63 = vld [vmem:[%s1353_s29 + $0xf8] sm:$0xff]  ;;  %p1157_p2 = scmp.lt.s32.totalorder %s801_s16, %s1155_s24 }
  0x22   : > { %2093 = vst [vmem:[#allocation9_spill] sm:$0xff] %v1356_v6  ;;  %v1359_v7 = vld [vmem:[%s1353_s29 + $0x80] sm:$0xff]  ;;  %v370_v8 = vsel %vm2058_vm0, %v1356_v6, 0.0  ;;  %v285_v38 = vadd.s32 216, %v1336_v1  ;;  %v288_v39 = vadd.s32 240, %v1336_v1  ;;  %v286_v40 = vadd.s32 224, %v1336_v1  ;;  %p1153_p1 = pneg %p1152_p0 }
  0x23   : > { %v1367_v9 = vsel %vm2059_vm1, %v1359_v7, 0.0  ;;  %v287_v41 = vadd.s32 232, %v1336_v1  ;;  %v1404_v42 = vadd.s32 %v1338_v2, %v259_v11  ;;  %v1407_v43 = vadd.s32 %v1338_v2, %v260_v12  ;;  %v1430_v52 = vld [vmem:[%s1353_s29 + $0x100] sm:$0xff]  ;;  %s1156_s25 = scalar_lea.vmem %s1155_s24, 32 }
  0x24   : > { %v1098_v10 = vpack.i.bf16 %v370_v8, %v1367_v9  ;;  %v1410_v44 = vsel %vm213_vm2, %v370_v8, 0.0  ;;  %v1413_v45 = vadd.s32 %v1338_v2, %v261_v13  ;;  %v1416_v46 = vadd.s32 %v1338_v2, %v289_v30  ;;  %2095 = vst [vmem:[#allocation11_spill] sm:$0xff] %v1430_v52  ;;  %v233_v8 = vld [vmem:[%s1353_s29 + $0x70] sm:$0xff]  ;;  %v1550_v30 = vld [vmem:[%s1353_s29 + $0x60] sm:$0xff]  ;;  %p1158_p3 = scmp.lt.s32.totalorder %s1156_s25, %s1150_s20 }
  0x25   : > { %v1419_v47 = vadd.s32 %v1338_v2, %v290_v31  ;;  %v1422_v48 = vadd.s32 %v1338_v2, %v262_v14  ;;  %v1425_v49 = vadd.s32 %v1338_v2, %v263_v15  ;;  %v310_v50 = vadd.s32 %v1338_v2, %v272_v24  ;;  %v249_v14 = vld [vmem:[%s1353_s29 + $0xf0] sm:$0xff] }
  0x26   : > { %1099 = vxpose.xlu0.b32.start [1/16] (narrow) %v1098_v10, 32  ;;  %v311_v51 = vadd.s32 %v1338_v2, %v273_v25  ;;  %v1433_v53 = vadd.s32 %v1338_v2, %v264_v16  ;;  %v1436_v54 = vadd.s32 %v1338_v2, %v265_v17  ;;  %v1439_v55 = vadd.s32 %v1338_v2, %v266_v18  ;;  %v234_v10 = vld [vmem:[%s1353_s29 + $0x78] sm:$0xff]  ;;  %v1498_v18 = vld [vmem:[%s1353_s29 + $0x8] sm:$0xff]  ;;  %p1159_p5 = por %p1158_p3, %p1157_p2 }
  0x27   : > { %2094 = vst [vmem:[#allocation10_spill] sm:$0xff] %v1419_v47  ;;  %v326_v56 = vadd.s32 %v1338_v2, %v288_v39  ;;  %v1443_v57 = vadd.s32 %v1338_v2, %v267_v19  ;;  %v1446_v58 = vadd.s32 %v1338_v2, %v268_v20  ;;  %v1449_v59 = vadd.s32 %v1338_v2, %v269_v21  ;;  %v1504_v19 = vld [vmem:[%s1353_s29 + $0x10] sm:$0xff]  ;;  %v1507_v20 = vld [vmem:[%s1353_s29 + $0xe8] sm:$0xff] }
  0x28   : > { %v1452_v60 = vadd.s32 %v1338_v2, %v270_v22  ;;  %v1455_v61 = vadd.s32 %v1338_v2, %v271_v23  ;;  %v1458_v62 = vadd.s32 %v1338_v2, %v287_v41  ;;  %vm364_vm3 = vcmp.lt.s32.totalorder %v1416_v46, 300  ;;  %2100 = vst [vmem:[#allocation16_spill] sm:$0xff] %v1507_v20  ;;  %v1591_v41 = vld [vmem:[%s1353_s29 + $0x58] sm:$0xff]  ;;  %p1160_p6 = pnand %p1159_p5, %p1153_p1 }
  0x29   : > { %vm2057_vm4 = vcmp.lt.s32.totalorder %v1419_v47, 300  ;;  %v1464_v0 = vadd.s32 %v1338_v2, %v275_v26  ;;  %vm347_vm5 = vcmp.lt.s32.totalorder %v310_v50, 300  ;;  %vm348_vm6 = vcmp.lt.s32.totalorder %v311_v51, 300  ;;  %966 = vmatprep.subr.msk.mxu0 %vm364_vm3, %v250_v63  ;;  %v1527_v26 = vld [vmem:[%s1353_s29 + $0x68] sm:$0xff]  ;;  %v1609_v51 = vld [vmem:[%s1353_s29 + $0xd0] sm:$0xff] }
  0x2a   : > { %2096 = vst [vmem:[#allocation12_spill] sm:$0xff] %v1458_v62  ;;  %v1469_v3 = vsel %vm2057_vm4, %v1430_v52, 0.0  ;;  %v1476_v11 = vadd.s32 %v1338_v2, %v276_v27  ;;  %v1479_v12 = vadd.s32 %v1338_v2, %v277_v28  ;;  %v1482_v13 = vadd.s32 %v1338_v2, %v286_v40  ;;  %967 = vmatpush3.msk.msra.mxu0 %vm348_vm6, %v234_v10  ;;  %v1539_v28 = vld [vmem:[%s1353_s29 + $0x18] sm:$0xff]  ;;  %v1709_v52 = vld [vmem:[%s1353_s29 + $0xb0] sm:$0xff] }
  0x2b   : > { %2097 = vst [vmem:[#allocation13_spill] sm:$0xff] %v1469_v3  ;;  %vm363_vm7 = vcmp.lt.s32.totalorder %v326_v56, 300  ;;  %475 = vxpose.xlu1.b32.start [1/5] (short) (narrow) %v1469_v3, 32  ;;  %v1488_v15 = vadd.s32 %v1338_v2, %v278_v29  ;;  %v1491_v16 = vadd.s32 %v1338_v2, %v279_v32  ;;  %v1494_v17 = vadd.s32 %v1338_v2, %v285_v38  ;;  %v1542_v29 = vld [vmem:[%s1353_s29 + $0xe0] sm:$0xff] }
  0x2c   : > { %2098 = vst [vmem:[#allocation14_spill] sm:$0xff] %v1482_v13  ;;  %vm2062_vm8 = vcmp.lt.s32.totalorder %v1404_v42, 300  ;;  %968 = vmatprep.subr.msk.mxu0 %vm363_vm7, %v249_v14  ;;  %vm2065_vm9 = vcmp.lt.s32.totalorder %v1407_v43, 300  ;;  %vm2054_vm10 = vcmp.lt.s32.totalorder %v1458_v62, 300  ;;  %v1510_v21 = vsel %vm347_vm5, %v233_v8, 0.0  ;;  %2104 = vst [vmem:[#allocation20_spill] sm:$0xff] %v1542_v29 }
  0x2d   : > { %2099 = vst [vmem:[#allocation15_spill] sm:$0xff] %v1494_v17  ;;  %v1513_v22 = vsel %vm348_vm6, %v234_v10, 0.0  ;;  %969 = vmatpush3.msk.msra.mxu0 %vm347_vm5, %v233_v8  ;;  %v1517_v23 = vadd.s32 %v1338_v2, %v280_v33  ;;  %v1520_v24 = vadd.s32 %v1338_v2, %v281_v34  ;;  %v1523_v25 = vadd.s32 %v1338_v2, %v283_v36  ;;  %v1566_v33 = vld [vmem:[%s1353_s29 + $0x20] sm:$0xff]  ;;  %v1569_v34 = vld [vmem:[%s1353_s29 + $0xd8] sm:$0xff] }
  0x2e   : > { %vm2066_vm11 = vcmp.lt.s32.totalorder %v1455_v61, 300  ;;  %970 = vmatprep.subr.msk.mxu0 %vm2054_vm10, %v1507_v20  ;;  %v1533_v27 = vadd.s32 %v1338_v2, %v284_v37  ;;  %vm2071_vm12 = vcmp.lt.s32.totalorder %v1413_v45, 300  ;;  %vm337_vm13 = vcmp.lt.s32.totalorder %v1422_v48, 300  ;;  %2105 = vst [vmem:[#allocation21_spill] sm:$0xff] %v1569_v34  ;;  %2107 = vst [vmem:[#allocation23_spill] sm:$0xff] %v1609_v51 }
  0x2f   : > { %2101 = vst [vmem:[#allocation17_spill] sm:$0xff] %v1520_v24  ;;  %2102 = vst [vmem:[#allocation18_spill] sm:$0xff] %v1523_v25  ;;  %vm2055_vm14 = vcmp.lt.s32.totalorder %v1482_v13, 300  ;;  %971 = vmatpush3.msk.msra.mxu0 %vm2066_vm11, %v1527_v26  ;;  %vm2075_vm15 = vcmp.lt.s32.totalorder %v1452_v60, 300  ;;  %vm2056_vm5 = vcmp.lt.s32.totalorder %v1494_v17, 300  ;;  %v1555_v31 = vsel %vm2062_vm8, %v1498_v18, 0.0 }
  0x30   : > { %2103 = vst [vmem:[#allocation19_spill] sm:$0xff] %v1533_v27  ;;  %v1560_v32 = vsel %vm2065_vm9, %v1504_v19, 0.0  ;;  %972 = vmatprep.subr.msk.mxu0 %vm2055_vm14, %v1542_v29  ;;  %v1572_v36 = vsel %vm363_vm7, %v249_v14, 0.0  ;;  %v1576_v37 = vsel %vm364_vm3, %v250_v63, 0.0  ;;  %v701_v38 = vsel %vm213_vm2, %v1555_v31, 0.0  ;;  %v1622_v63 = vld [vmem:[%s1353_s29 + $0x88] sm:$0xff] }
  0x31   : > { %v703_v39 = vsel %vm213_vm2, %v1560_v32, 0.0  ;;  %973 = vmatpush3.msk.msra.mxu0 %vm2075_vm15, %v1550_v30  ;;  %v1587_v40 = vadd.s32 %v1338_v2, %v1395_v35  ;;  %vm344_vm6 = vcmp.lt.s32.totalorder %v1449_v59, 300  ;;  %v1596_v46 = vsel %vm2071_vm12, %v1539_v28, 0.0  ;;  %v1606_v35 = vld [vmem:[%s1353_s29 + $0x28] sm:$0xff]  ;;  %v225_v14 = vld [vmem:[%s1353_s29 + $0x30] sm:$0xff]  ;;  %v226_v13 = vld [vmem:[%s1353_s29 + $0x38] sm:$0xff] }
  0x32   : > { %v702_v50 = vadd.f32 %v701_v38, %v1410_v44  ;;  %974 = vmatprep.subr.msk.mxu0 %vm2056_vm5, %v1569_v34  ;;  %vm338_vm3 = vcmp.lt.s32.totalorder %v1425_v49, 300  ;;  %vm339_vm7 = vcmp.lt.s32.totalorder %v1433_v53, 300  ;;  %vm2061_vm10 = vcmp.lt.s32.totalorder %v1533_v27, 300  ;;  %v1619_v44 = vld [vmem:[%s1353_s29 + $0x50] sm:$0xff]  ;;  %v1637_v38 = vld [vmem:[%s1353_s29 + $0xc8] sm:$0xff]  ;;  %v1662_v29 = vld [vmem:[%s1353_s29 + $0xc0] sm:$0xff] }
  0x33   : > { %2106 = vst [vmem:[#allocation22_spill] sm:$0xff] %v1587_v40  ;;  %v705_v56 = vsel %vm213_vm2, %v1596_v46, 0.0  ;;  %975 = vmatpush3.msk.msra.mxu0 %vm344_vm6, %v1591_v41  ;;  %vm343_vm14 = vcmp.lt.s32.totalorder %v1446_v58, 300  ;;  %vm2074_vm5 = vcmp.lt.s32.totalorder %v1464_v0, 300  ;;  %v1627_v8 = vsel %vm337_vm13, %v1566_v33, 0.0  ;;  %2108 = vst [vmem:[#allocation24_spill] sm:$0xff] %v1637_v38 }
  0x34   : > { %v704_v10 = vadd.f32 %v703_v39, %v702_v50  ;;  %976 = vmatprep.subr.msk.mxu0 %vm2061_vm10, %v1609_v51  ;;  %vm340_vm4 = vcmp.lt.s32.totalorder %v1436_v54, 300  ;;  %vm341_vm0 = vcmp.lt.s32.totalorder %v1439_v55, 300  ;;  %vm2070_vm1 = vcmp.lt.s32.totalorder %v1523_v25, 300  ;;  %v228_v39 = vld [vmem:[%s1353_s29 + $0x48] sm:$0xff]  ;;  %v1648_v50 = vld [vmem:[%s1353_s29 + $0x90] sm:$0xff]  ;;  %2109 = vst [vmem:[#allocation25_spill] sm:$0xff] %v1662_v29 }
  0x35   : > { %v707_v3 = vsel %vm213_vm2, %v1627_v8, 0.0  ;;  %977 = vmatpush3.msk.msra.mxu0 %vm343_vm14, %v1619_v44  ;;  %vm342_vm10 = vcmp.lt.s32.totalorder %v1443_v57, 300  ;;  %vm351_vm8 = vcmp.lt.s32.totalorder %v1476_v11, 300  ;;  %v1653_v62 = vsel %vm338_vm3, %v1606_v35, 0.0  ;;  %v1686_v51 = vld [vmem:[%s1353_s29 + $0xb8] sm:$0xff]  ;;  %v255_v58 = vld [vmem:[%s1353_s29 + $0x120] sm:$0xff] }
  0x36   : > { %v706_v20 = vadd.f32 %v705_v56, %v704_v10  ;;  %978 = vmatprep.subr.msk.mxu0 %vm2070_vm1, %v1637_v38  ;;  %vm352_vm9 = vcmp.lt.s32.totalorder %v1479_v12, 300  ;;  %vm357_vm11 = vcmp.lt.s32.totalorder %v1587_v40, 300  ;;  %v1667_v17 = vsel %vm2074_vm5, %v1622_v63, 0.0  ;;  %v227_v10 = vld [vmem:[%s1353_s29 + $0x40] sm:$0xff] }
  0x37   : > { %2110 = vst [vmem:[#allocation26_spill] sm:$0xff] %v1667_v17  ;;  %v709_v56 = vsel %vm213_vm2, %v1653_v62, 0.0  ;;  %979 = vmatpush3.msk.msra.mxu0 %vm342_vm10, %v228_v39  ;;  %vm353_vm1 = vcmp.lt.s32.totalorder %v1488_v15, 300  ;;  %vm354_vm12 = vcmp.lt.s32.totalorder %v1491_v16, 300  ;;  %v1678_v34 = vsel %vm339_vm7, %v225_v14, 0.0 }
  0x38   : > { %v708_v27 = vadd.f32 %v707_v3, %v706_v20  ;;  %980 = vmatprep.subr.msk.mxu0 %vm357_vm11, %v1662_v29  ;;  %vm355_vm5 = vcmp.lt.s32.totalorder %v1517_v23, 300  ;;  %vm356_vm15 = vcmp.lt.s32.totalorder %v1520_v24, 300  ;;  %v1691_v25 = vsel %vm351_vm8, %v1648_v50, 0.0  ;;  %v238_v3 = vld [vmem:[%s1353_s29 + $0x98] sm:$0xff]  ;;  %v240_v24 = vld [vmem:[%s1353_s29 + $0xa8] sm:$0xff] }
  0x39   : > { %v711_v38 = vsel %vm213_vm2, %v1678_v34, 0.0  ;;  %981 = vmatpush3.msk.msra.mxu0 %vm341_vm0, %v227_v10  ;;  %v1700_v20 = vsel %vm340_vm4, %v226_v13, 0.0  ;;  %v1100_v29 = vpack.i.bf16 %v1555_v31, %v1667_v17  ;;  %v291_v47 = vadd.s32 264, %v1336_v1  ;;  %v1722_v17 = vld [vmem:[%s1353_s29 + $0x108] sm:$0xff] }
  0x3a   : > { %2111 = vst [vmem:[#allocation27_spill] sm:$0xff] %v1700_v20  ;;  %v710_v40 = vadd.f32 %v709_v56, %v708_v27  ;;  %982 = vmatprep.subr.msk.mxu0 %vm356_vm15, %v1686_v51  ;;  %v1713_v4 = vsel %vm341_vm0, %v227_v10, 0.0  ;;  %v713_v6 = vsel %vm213_vm2, %v1700_v20, 0.0  ;;  %v292_v27 = vadd.s32 272, %v1336_v1  ;;  %v2120_v23 = vld [vmem:[#allocation9_spill] sm:$0xff] }
  0x3b   : > { %v293_v31 = vadd.s32 280, %v1336_v1  ;;  %983 = vmatpush3.msk.msra.mxu0 %vm340_vm4, %v226_v13  ;;  %1101 = vxpose.xlu0.b32.cont [2/16] (narrow) %v1100_v29, 32  ;;  %v1725_v55 = vadd.s32 %v1338_v2, %v291_v47  ;;  %v1102_v10 = vpack.i.bf16 %v1560_v32, %v1691_v25  ;;  %v294_v20 = vadd.s32 288, %v1336_v1  ;;  %v239_v1 = vld [vmem:[%s1353_s29 + $0xa0] sm:$0xff] }
  0x3c   : > { %v712_v56 = vadd.f32 %v711_v38, %v710_v40  ;;  %984 = vmatprep.subr.msk.mxu0 %vm355_vm5, %v1709_v52  ;;  %v1736_v54 = vsel %vm342_vm10, %v228_v39, 0.0  ;;  %v1740_v13 = vsel %vm352_vm9, %v238_v3, 0.0  ;;  %v715_v47 = vsel %vm213_vm2, %v1713_v4, 0.0  ;;  %v253_v40 = vld [vmem:[%s1353_s29 + $0x110] sm:$0xff] }
  0x3d   : > { %v330_v29 = vadd.s32 %v1338_v2, %v292_v27  ;;  %985 = vmatpush3.msk.msra.mxu0 %vm339_vm7, %v225_v14  ;;  %vm366_vm0 = vcmp.lt.s32.totalorder %v1725_v55, 300  ;;  %v331_v57 = vadd.s32 %v1338_v2, %v293_v31  ;;  %v332_v38 = vadd.s32 %v1338_v2, %v294_v20  ;;  %v254_v27 = vld [vmem:[%s1353_s29 + $0x118] sm:$0xff] }
  0x3e   : > { %v714_v32 = vadd.f32 %v713_v6, %v712_v56  ;;  %986 = vmatprep.subr.msk.mxu0 %vm354_vm12, %v240_v24  ;;  %v717_v39 = vsel %vm213_vm2, %v1736_v54, 0.0  ;;  %v1759_v53 = vsel %vm366_vm0, %v1722_v17, 0.0  ;;  %v1767_v2 = vsel %vm343_vm14, %v1619_v44, 0.0  ;;  %v2129_v56 = vld [vmem:[#allocation25_spill] sm:$0xff] }
  0x3f   : > { %vm367_vm4 = vcmp.lt.s32.totalorder %v330_v29, 300  ;;  %987 = vmatpush3.msk.msra.mxu0 %vm338_vm3, %v1606_v35  ;;  %476 = vxpose.xlu1.b32.cont [2/5] (short) (narrow) %v1759_v53, 32  ;;  %v1104_v14 = vpack.i.bf16 %v1596_v46, %v1740_v13  ;;  %v1774_v20 = vsel %vm353_vm1, %v239_v1, 0.0  ;;  %v719_v49 = vsel %vm213_vm2, %v1767_v2, 0.0 }
  0x40   : > { %v716_v6 = vadd.f32 %v715_v47, %v714_v32  ;;  %1103 = vxpose.xlu0.b32.cont [3/16] (narrow) %v1102_v10, 32  ;;  %v1779_v35 = vsel %vm367_vm4, %v253_v40, 0.0  ;;  %vm369_vm10 = vcmp.lt.s32.totalorder %v332_v38, 300  ;;  %988 = vmatprep.subr.msk.mxu0 %vm353_vm1, %v239_v1  ;;  %v1787_v44 = vsel %vm344_vm6, %v1591_v41, 0.0  ;;  %v2132_v38 = vld [vmem:[#allocation18_spill] sm:$0xff] }
  0x41   : > { %vm368_vm14 = vcmp.lt.s32.totalorder %v331_v57, 300  ;;  %989 = vmatpush3.msk.msra.mxu0 %vm337_vm13, %v1566_v33  ;;  %1019 = vmatprep.subr.msk.mxu1 %vm369_vm10, %v255_v58  ;;  %v721_v31 = vsel %vm213_vm2, %v1787_v44, 0.0  ;;  %v1126_v15 = vpack.i.bf16 %v1510_v21, %v1572_v36  ;;  %vm2112_vm1 = vcmp.lt.s32.totalorder %v1452_v60, 300  ;;  %v2131_v57 = vld [vmem:[#allocation24_spill] sm:$0xff] }
  0x42   : > { %v718_v46 = vadd.f32 %v717_v39, %v716_v6  ;;  %990 = vmatprep.subr.msk.mxu0 %vm352_vm9, %v238_v3  ;;  %1020 = vmatpush3.msk.msra.mxu1 %vm369_vm10, %v255_v58  ;;  %v1804_v59 = vsel %vm2112_vm1, %v1550_v30, 0.0  ;;  %v1106_v33 = vpack.i.bf16 %v1627_v8, %v1774_v20  ;;  %v1128_v41 = vpack.i.bf16 %v1513_v22, %v1576_v37 }
  0x43   : > { %477 = vxpose.xlu1.b32.cont [3/5] (short) (narrow) %v1779_v35, 32  ;;  %v391_v12 = vsel %vm354_vm12, %v240_v24, 0.0  ;;  %v723_v3 = vsel %vm213_vm2, %v1804_v59, 0.0  ;;  %v1816_v60 = vsel %vm368_vm14, %v254_v27, 0.0  ;;  %vm2113_vm9 = vcmp.lt.s32.totalorder %v1413_v45, 300  ;;  %1021 = vmatprep.subr.msk.mxu1 %vm368_vm14, %v254_v27 }
  0x44   : > { %v720_v48 = vadd.f32 %v719_v49, %v718_v46  ;;  %1105 = vxpose.xlu0.b32.cont [4/16] (narrow) %v1104_v14, 32  ;;  %991 = vmatpush3.msk.msra.mxu0 %vm2113_vm9, %v1539_v28  ;;  %vm2114_vm13 = vcmp.lt.s32.totalorder %v1455_v61, 300  ;;  %vm2115_vm12 = vcmp.lt.s32.totalorder %v1407_v43, 300  ;;  %v1108_v61 = vpack.i.bf16 %v1653_v62, %v391_v12  ;;  %v2124_v28 = vld [vmem:[#allocation10_spill] sm:$0xff]  ;;  %v2134_v46 = vld [vmem:[#allocation23_spill] sm:$0xff] }
  0x45   : > { %v1825_v30 = vsel %vm2114_vm13, %v1527_v26, 0.0  ;;  %992 = vmatprep.subr.msk.mxu0 %vm351_vm8, %v1648_v50  ;;  %1022 = vmatpush3.msk.msra.mxu1 %vm368_vm14, %v254_v27  ;;  %v392_v11 = vsel %vm355_vm5, %v1709_v52, 0.0  ;;  %v727_v24 = vsel %vm213_vm2, %v1510_v21, 0.0  ;;  %v1845_v26 = vsel %vm369_vm10, %v255_v58, 0.0  ;;  %v2128_v50 = vld [vmem:[#allocation27_spill] sm:$0xff] }
  0x46   : > { %v722_v8 = vadd.f32 %v721_v31, %v720_v48  ;;  %v725_v16 = vsel %vm213_vm2, %v1825_v30, 0.0  ;;  %993 = vmatpush3.msk.msra.mxu0 %vm2115_vm12, %v1504_v19  ;;  %1023 = vmatprep.subr.msk.mxu1 %vm367_vm4, %v253_v40  ;;  %vm2116_vm8 = vcmp.lt.s32.totalorder %v1464_v0, 300  ;;  %vm2117_vm6 = vcmp.lt.s32.totalorder %v1404_v42, 300 }
  0x47   : > { %478 = vxpose.xlu1.b32.cont [4/5] (short) (narrow) %v1816_v60, 32  ;;  %994 = vmatprep.subr.msk.mxu0 %vm2116_vm8, %v1622_v63  ;;  %v729_v52 = vsel %vm213_vm2, %v1513_v22, 0.0  ;;  %vm2118_vm5 = vcmp.lt.s32.totalorder %v1346_v5, 300  ;;  %v1110_v42 = vpack.i.bf16 %v1678_v34, %v392_v11  ;;  %v731_v0 = vsel %vm213_vm2, %v1367_v9, 0.0  ;;  %v2121_v5 = vld [vmem:[#allocation8_spill] sm:$0xff]  ;;  %v2127_v34 = vld [vmem:[#allocation26_spill] sm:$0xff] }
  0x48   : > { %v724_v45 = vadd.f32 %v723_v3, %v722_v8  ;;  %1107 = vxpose.xlu0.b32.cont [5/16] (narrow) %v1106_v33, 32  ;;  %1024 = vmatpush3.msk.msra.mxu1 %vm367_vm4, %v253_v40  ;;  %v393_v19 = vsel %vm356_vm15, %v1686_v51, 0.0  ;;  %vm2122_vm3 = vcmp.lt.s32.totalorder %v2121_v5, 300  ;;  %vm2125_vm7 = vcmp.lt.s32.totalorder %v2124_v28, 300  ;;  %v2137_v3 = vld [vmem:[#allocation21_spill] sm:$0xff]  ;;  %v2138_v8 = vld [vmem:[#allocation15_spill] sm:$0xff] }
  0x49   : > { %995 = vmatpush3.msk.msra.mxu0 %vm2117_vm6, %v1498_v18  ;;  %1025 = vmatprep.subr.msk.mxu1 %vm366_vm0, %v1722_v17  ;;  %v733_v9 = vsel %vm213_vm2, %v2127_v34, 0.0  ;;  %v1112_v51 = vpack.i.bf16 %v2128_v50, %v393_v19  ;;  %v394_v10 = vsel %vm357_vm11, %v2129_v56, 0.0  ;;  %v735_v47 = vsel %vm213_vm2, %v1691_v25, 0.0 }
  0x4a   : > { %v726_v43 = vadd.f32 %v725_v16, %v724_v45  ;;  %996 = vmatprep.subr.msk.mxu0 %vm2118_vm5, %v1359_v7  ;;  %1026 = vmatpush3.msk.msra.mxu1 %vm366_vm0, %v1722_v17  ;;  %v2123_v7 = vld [vmem:[#allocation11_spill] sm:$0xff]  ;;  %vm2126_vm0 = vmmov %vm2125_vm7  ;;  %v737_v1 = vsel %vm213_vm2, %v1740_v13, 0.0  ;;  %v1114_v40 = vpack.i.bf16 %v1713_v4, %v394_v10  ;;  %vm2133_vm15 = vcmp.lt.s32.totalorder %v2132_v38, 300 }
  0x4b   : > { %479 = vxpose.xlu1.b32.end [5/5] (short) (narrow) %v1845_v26, 32  ;;  %997 = vmatpush3.msk.msra.mxu0 %vm2122_vm3, %v2120_v23  ;;  %v395_v39 = vsel %vm2133_vm15, %v2131_v57, 0.0  ;;  %v739_v6 = vsel %vm213_vm2, %v1774_v20, 0.0  ;;  %v741_v49 = vsel %vm213_vm2, %v391_v12, 0.0  ;;  %v2135_v13 = vld [vmem:[#allocation19_spill] sm:$0xff]  ;;  %v743_v4 = vsel %vm213_vm2, %v392_v11, 0.0 }
  0x4c   : > { %v728_v62 = vadd.f32 %v727_v24, %v726_v43  ;;  %1109 = vxpose.xlu0.b32.cont [6/16] (narrow) %v1108_v61, 32  ;;  %1027 = vmatprep.subr.msk.mxu1 %vm2125_vm7, %v2123_v7  ;;  %v1116_v25 = vpack.i.bf16 %v1736_v54, %v395_v39  ;;  %vm2136_vm11 = vcmp.lt.s32.totalorder %v2135_v13, 300  ;;  %v745_v48 = vsel %vm213_vm2, %v393_v19, 0.0  ;;  %v2140_v24 = vld [vmem:[#allocation20_spill] sm:$0xff]  ;;  %v2141_v43 = vld [vmem:[#allocation14_spill] sm:$0xff] }
  0x4d   : > { %1028 = vmatpush3.msk.msra.mxu1 %vm2126_vm0, %v2123_v7  ;;  %v396_v27 = vsel %vm2136_vm11, %v2134_v46, 0.0  ;;  %vm2139_vm4 = vcmp.lt.s32.totalorder %v2138_v8, 300  ;;  %v747_v16 = vsel %vm213_vm2, %v394_v10, 0.0  ;;  %v749_v45 = vsel %vm213_vm2, %v395_v39, 0.0  ;;  %v2143_v19 = vld [vmem:[#allocation16_spill] sm:$0xff] }
  0x4e   : > { %v730_v17 = vadd.f32 %v729_v52, %v728_v62  ;;  %v1118_v20 = vpack.i.bf16 %v1767_v2, %v396_v27  ;;  %v397_v12 = vsel %vm2139_vm4, %v2137_v3, 0.0  ;;  %vm2142_vm10 = vcmp.lt.s32.totalorder %v2141_v43, 300  ;;  %v2144_v23 = vld [vmem:[#allocation12_spill] sm:$0xff] }
  0x4f   : > { %v1120_v11 = vpack.i.bf16 %v1787_v44, %v397_v12  ;;  %v398_v52 = vsel %vm2142_vm10, %v2140_v24, 0.0  ;;  %v751_v62 = vsel %vm213_vm2, %v396_v27, 0.0  ;;  %vm2145_vm14 = vcmp.lt.s32.totalorder %v2144_v23, 300 }
  0x50   : > { %v732_v63 = vadd.f32 %v731_v0, %v730_v17  ;;  %1111 = vxpose.xlu0.b32.cont [7/16] (narrow) %v1110_v42, 32  ;;  %v753_v42 = vsel %vm213_vm2, %v397_v12, 0.0  ;;  %v1122_v18 = vpack.i.bf16 %v1804_v59, %v398_v52  ;;  %v399_v5 = vsel %vm2145_vm14, %v2143_v19, 0.0 }
  0x51   : > { %v755_v7 = vsel %vm213_vm2, %v398_v52, 0.0  ;;  %v757_v28 = vsel %vm213_vm2, %v399_v5, 0.0  ;;  %v1124_v34 = vpack.i.bf16 %v1825_v30, %v399_v5  ;;  %v761_v59 = vsel %vm213_vm2, %v1576_v37, 0.0 }
  0x52   : > { %v734_v29 = vadd.f32 %v733_v9, %v732_v63  ;;  %v759_v9 = vsel %vm213_vm2, %v1572_v36, 0.0  ;;  %v765_v10 = vsel %vm213_vm2, %v1759_v53, 0.0  ;;  %v767_v30 = vsel %vm213_vm2, %v1779_v35, 0.0 }
  0x53   : > { %v771_v53 = vsel %vm213_vm2, %v1845_v26, 0.0  ;;  %vm507_vm1 = vcmask 326656   ;;  %v1258_v27 = vmov 0.0   ;;  %vm211_vm9 = vcmask 253952  }
  0x54   : > { %v736_v32 = vadd.f32 %v735_v47, %v734_v29  ;;  %1113 = vxpose.xlu0.b32.cont [8/16] (narrow) %v1112_v51, 32  ;;  %v2146_v51 = vld [vmem:[#allocation13_spill] sm:$0xff]  ;;  %214 = vst.msk [vmem:[%s1951_s4] sm:$0xff] %vm213_vm2, %v1258_v27  ;;  %215 = vst.msk [vmem:[%s1951_s4 + $0x8] sm:$0xff] %vm213_vm2, %v1258_v27 }
  0x55   : > { %v763_v56 = vsel %vm213_vm2, %v2146_v51, 0.0  ;;  %216 = vst.msk [vmem:[%s1951_s4 + $0x10] sm:$0xff] %vm213_vm2, %v1258_v27  ;;  %217 = vst.msk [vmem:[%s1951_s4 + $0x18] sm:$0xff] %vm213_vm2, %v1258_v27 }
  0x56   : > { %v738_v14 = vadd.f32 %v737_v1, %v736_v32  ;;  %v769_v1 = vsel %vm213_vm2, %v1816_v60, 0.0  ;;  %212 = vst.msk [vmem:[%s179_s5] sm:$0x1] %vm211_vm9, %v1258_v27 }
  0x58   : > { %v740_v58 = vadd.f32 %v739_v6, %v738_v14  ;;  %1115 = vxpose.xlu0.b32.cont [9/16] (narrow) %v1114_v40, 32 }
  0x5a   : > { %v742_v31 = vadd.f32 %v741_v49, %v740_v58 }
  0x5c   : > { %v744_v33 = vadd.f32 %v743_v4, %v742_v31  ;;  %1117 = vxpose.xlu0.b32.cont [10/16] (narrow) %v1116_v25, 32 }
  0x5e   : > { %v746_v54 = vadd.f32 %v745_v48, %v744_v33 }
  0x60   : > { %v748_v61 = vadd.f32 %v747_v16, %v746_v54  ;;  %1119 = vxpose.xlu0.b32.cont [11/16] (narrow) %v1118_v20, 32  ;;  %v699_v20 = vld [vmem:[%s179_s5] sm:$0x1] }
  0x62   : > { %v750_v2 = vadd.f32 %v749_v45, %v748_v61 }
  0x64   : > { %v752_v0 = vadd.f32 %v751_v62, %v750_v2  ;;  %1121 = vxpose.xlu0.b32.cont [12/16] (narrow) %v1120_v11, 32 }
  0x66   : > { %v754_v44 = vadd.f32 %v753_v42, %v752_v0 }
  0x68   : > { %v756_v17 = vadd.f32 %v755_v7, %v754_v44  ;;  %1123 = vxpose.xlu0.b32.cont [13/16] (narrow) %v1122_v18, 32 }
  0x6a   : > { %v758_v63 = vadd.f32 %v757_v28, %v756_v17 }
  0x6c   : > { %v760_v50 = vadd.f32 %v759_v9, %v758_v63  ;;  %1125 = vxpose.xlu0.b32.cont [14/16] (narrow) %v1124_v34, 32 }
  0x6e   : > { %v762_v55 = vadd.f32 %v761_v59, %v760_v50 }
  0x70   : > { %v764_v47 = vadd.f32 %v763_v56, %v762_v55  ;;  %1127 = vxpose.xlu0.b32.cont [15/16] (narrow) %v1126_v15, 32 }
  0x72   : > { %v766_v29 = vadd.f32 %v765_v10, %v764_v47 }
  0x74   : > { %v768_v32 = vadd.f32 %v767_v30, %v766_v29  ;;  %1129 = vxpose.xlu0.b32.end [16/16] (narrow) %v1128_v41, 32 }
  0x76   : > { %v770_v40 = vadd.f32 %v769_v1, %v768_v32 }
  0x78   : > { %v772_v57 = vadd.f32 %v771_v53, %v770_v40 }
  0x7a   : > { %v773_v46 = vrot.slane %v772_v57, 4 }
  0x7c   : > { %v774_v13 = vadd.f32 %v773_v46, %v772_v57 }
  0x7e   : > { %v775_v4 = vrot.slane %v774_v13, 2 }
  0x80   : > { %v776_v31 = vadd.f32 %v775_v4, %v774_v13 }
  0x82   : > { %v777_v48 = vrot.slane %v776_v31, 1 }
  0x84   : > { %v778_v33 = vadd.f32 %v777_v48, %v776_v31 }
  0x86   : > { %v779_v3 = vadd.f32 %v778_v33, %v699_v20 }
  0x88   : > { %781 = vst.msk [vmem:[%s179_s5] sm:$0x1] %vm211_vm9, %v779_v3 }
  0xb4   : > { %v1130_v38 = vpop.trf.xlu0 }
  0xb5   : > { %v1131_v21 = vunpack.i.l.bf16 %v1130_v38  ;;  %v1134_v36 = vunpack.i.h.bf16 %v1130_v38 }
  0xb7   : > { %584 = vmatprep.mubr.f32.mxu0 %v1131_v21  ;;  %v491_v35 = vpop.trf.xlu1 }
  0xb8   : > { %v1135_v15 = vpop.trf.xlu0  ;;  %585 = vmatmul.mubr.f32.vlgmr.msra.gmra.mxu0 %v1134_v36  ;;  %1029 = vmatprep.mubr.msk.f32.mxu1 %vm507_vm1, %v491_v35 }
  0xb9   : > { %v1136_v60 = vunpack.i.l.bf16 %v1135_v15  ;;  %v1139_v39 = vunpack.i.h.bf16 %v1135_v15 }
  0xbb   : > { %589 = vmatprep.mubr.f32.mxu0 %v1136_v60  ;;  %v492_v22 = vpop.trf.xlu1 }
  0xbc   : > { %v1140_v37 = vpop.trf.xlu0  ;;  %590 = vmatmul.mubr.f32.gmra.mxu0 %v1139_v39  ;;  %1030 = vmatmul.mubr.msk.f32.vlgmr.msra.gmra.mxu1 %vm507_vm1, %v492_v22 }
  0xbd   : > { %v1141_v41 = vunpack.i.l.bf16 %v1140_v37  ;;  %v1144_v26 = vunpack.i.h.bf16 %v1140_v37 }
  0xbf   : > { %594 = vmatprep.mubr.f32.mxu0 %v1141_v41  ;;  %v493_v6 = vpop.trf.xlu1 }
  0xc0   : > { %v1145_v14 = vpop.trf.xlu0  ;;  %595 = vmatmul.mubr.f32.gmra.mxu0 %v1144_v26  ;;  %1032 = vmatprep.mubr.msk.f32.mxu1 %vm507_vm1, %v493_v6 }
  0xc1   : > { %v1149_v49 = vunpack.i.h.bf16 %v1145_v14  ;;  %v1146_v58 = vunpack.i.l.bf16 %v1145_v14 }
  0xc3   : > { %599 = vmatprep.mubr.f32.mxu0 %v1146_v58  ;;  %v494_v25 = vpop.trf.xlu1 }
  0xc4   : > { %600 = vmatmul.mubr.f32.gmra.mxu0 %v1149_v49  ;;  %1033 = vmatmul.mubr.msk.f32.gmra.mxu1 %vm507_vm1, %v494_v25 }
  0xc5   : > { %1163 = shalt.err (!%p1160_p6)
}
  0xc6   : > { %s1164_s26 = scalar_lea.hbm %s1966_s15, 16  ;;  %s1168_s29 = scalar_lea.hbm %s2052_s1, 32 }
  0xc7   : > { %p1165_p7 = scmp.ne.s32.totalorder %s1966_s15, %s1164_s26  ;;  %p1169_p11 = scmp.lt.s32.totalorder %s1966_s15, %s2052_s1 }
  0xc8   : > { %p1170_p12 = scmp.lt.s32.totalorder %s1168_s29, %s1164_s26 }
  0xc9   : > { %p1166_p9 = pnand %p1165_p7, %p1318_p4 }
  0xca   : > { %p1171_p13 = por %p1170_p12, %p1169_p11 }
  0xcb   : > { %p1167_p10 = pneg %p1166_p9 }
  0xcd   : > { %p1172_p0 = pnand %p1171_p13, %p1167_p10 }
  0xcf   : > { %1175 = shalt.err (!%p1172_p0)
}
  0xd0   : > { %1035 = dma.vmem_to_hbm [thread:$0]  (%p1318_p4), %s801_s16, 16, %s1966_s15, %s783_s18   ;;  %v407_v11 = vld [vmem:[%s1951_s4] sm:$0xff]  ;;  %v408_v62 = vld [vmem:[%s1951_s4 + $0x8] sm:$0xff]  ;;  %v409_v28 = vld [vmem:[%s1951_s4 + $0x10] sm:$0xff] }
  0xd1   : > { %s965_s6 = sshll.u32 %s1248_s12, 9  ;;  %s813_s7 = sshll.u32 %s1951_s4, 4  ;;  %v410_v63 = vld [vmem:[%s1951_s4 + $0x18] sm:$0xff]  ;;  %s2000_s7 = int_to_ptr.vmem [resolvable:$true] %s813_s7 }
  0xd2   : > { %s1998_s16 = scalar_lea.hbm %s2053_s2, %s965_s6  ;;  %s787_s12 = scalar_lea.sflag [#allocation5], %s1948_s30 }
  0xd3   : > { %s1176_s18 = scalar_lea.vmem %s2000_s7, 512  ;;  %s1260_s20 = smov [#allocation4]  }
  0xd4   : > { %p1177_p1 = scmp.ne.s32.totalorder %s2000_s7, %s1176_s18  ;;  %s1180_s23 = sshll.u32 %s1260_s20, 4  ;;  %s1181_s23 = int_to_ptr.vmem [resolvable:$false] %s1180_s23 }
  0xd5   : > { %s1182_s24 = scalar_lea.vmem %s1181_s23, 1024  ;;  %p1183_p5 = scmp.lt.s32.totalorder %s2000_s7, %s1181_s23 }
  0xd6   : > { %p1178_p2 = pnand %p1177_p1, %p1318_p4  ;;  %p1184_p6 = scmp.lt.s32.totalorder %s1182_s24, %s1176_s18 }
  0xd8   : > { %p1179_p3 = pneg %p1178_p2  ;;  %p1185_p7 = por %p1184_p6, %p1183_p5 }
  0xda   : > { %p1186_p9 = pnand %p1185_p7, %p1179_p3 }
 0x178   : > { %v998_v8 = vpop.f32.mrf.mxu0 }
 0x17a   : > { %v999_v12 = vpop.f32.mrf.mxu0 }
 0x17b   : > { %v1000_v16 = vadd.f32 %v999_v12, %v998_v8 }
 0x17c   : > { %v1001_v54 = vpop.f32.mrf.mxu0  ;;  %v1031_v45 = vpop.f32.mrf.mxu1 }
 0x17e   : > { %v1002_v61 = vpop.f32.mrf.mxu0  ;;  %v671_v24 = vpop.f32.mrf.mxu1 }
 0x17f   : > { %v1003_v43 = vadd.f32 %v1002_v61, %v1001_v54  ;;  %v672_v52 = vadd.f32 %v1000_v16, %v671_v24 }
 0x180   : > { %v1004_v2 = vpop.f32.mrf.mxu0 }
 0x181   : > { %v677_v42 = vadd.f32 %v1031_v45, %v1003_v43  ;;  %v690_v0 = vadd.f32 %v672_v52, %v407_v11 }
 0x182   : > { %v1005_v18 = vpop.f32.mrf.mxu0 }
 0x183   : > { %v691_v19 = vadd.f32 %v677_v42, %v408_v62  ;;  %695 = vst.msk [vmem:[%s1951_s4] sm:$0xff] %vm213_vm2, %v690_v0  ;;  %v1006_v23 = vadd.f32 %v1005_v18, %v1004_v2 }
 0x184   : > { %v1007_v5 = vpop.f32.mrf.mxu0  ;;  %v1034_v7 = vpop.f32.mrf.mxu1 }
 0x185   : > { %696 = vst.msk [vmem:[%s1951_s4 + $0x8] sm:$0xff] %vm213_vm2, %v691_v19 }
 0x186   : > { %v1008_v44 = vpop.f32.mrf.mxu0  ;;  %v681_v17 = vpop.f32.mrf.mxu1 }
 0x187   : > { %v1009_v34 = vadd.f32 %v1008_v44, %v1007_v5  ;;  %v682_v9 = vadd.f32 %v1006_v23, %v681_v17 }
 0x189   : > { %v687_v59 = vadd.f32 %v1034_v7, %v1009_v34  ;;  %v692_v50 = vadd.f32 %v682_v9, %v409_v28 }
 0x18b   : > { %v693_v51 = vadd.f32 %v687_v59, %v410_v63  ;;  %697 = vst.msk [vmem:[%s1951_s4 + $0x10] sm:$0xff] %vm213_vm2, %v692_v50 }
 0x18d   : > { %698 = vst.msk [vmem:[%s1951_s4 + $0x18] sm:$0xff] %vm213_vm2, %v693_v51 }
 0x18e   : > { %1189 = shalt.err (!%p1186_p9)
}
 0x18f   : > { %s1190_s4 = scalar_lea.hbm %s1998_s16, 512  ;;  %s1194_s27 = scalar_lea.hbm %s2053_s2, 1024 }
 0x190   : > { %p1191_p10 = scmp.ne.s32.totalorder %s1998_s16, %s1190_s4  ;;  %p1195_p13 = scmp.lt.s32.totalorder %s1998_s16, %s2053_s2 }
 0x191   : > { %p1196_p0 = scmp.lt.s32.totalorder %s1194_s27, %s1190_s4 }
 0x192   : > { %p1192_p11 = pnand %p1191_p10, %p1318_p4 }
 0x193   : > { %p1197_p1 = por %p1196_p0, %p1195_p13 }
 0x194   : > { %p1193_p12 = pneg %p1192_p11 }
 0x196   : > { %p1198_p2 = pnand %p1197_p1, %p1193_p12 }
 0x198   : > { %1201 = shalt.err (!%p1198_p2)
}
 0x199   : > { %s1261_s3 = smov 128   ;;  %s1262_s5 = smov 8  }
 0x19a   : > { %1036 = dma.vmem_to_hbm [thread:$0]  (%p1318_p4), %s2000_s7, 512, %s1998_s16, %s787_s12, %s1261_s3, %s1261_s3, %s1262_s5  }
 0x19b PF: > { %p1046_p3 = scmp.ge.s32.totalorder %s1256_s14, 2  ;;  %s828_s6 = sand.u32 1, %s1236_s9  }
 0x19c   : > { %s829_s8 = scalar_lea.sflag [#allocation3], %s828_s6 }
 0x19d   : > { %p1040_p5 = pnand %p1046_p3, %p1325_p8 }
 0x19f   : > { %p1041_p6 = pneg %p1040_p5 }
 0x1a1   : > { %1227 = dma.done.wait (%p1041_p6), %s829_s8, 16  }
 0x1a2   : > { %1229 = vsyncadd (%p1041_p6), %s829_s8, 4294967280  ;;  %s837_s15 = scalar_lea.sflag [#allocation5], %s828_s6 }
 0x1a3   : > { %1231 = dma.done.wait (%p1041_p6), %s837_s15, 512  }
 0x1a4   : > { %1233 = vsyncadd (%p1041_p6), %s837_s15, 4294966784  ;;  %s19_s14 = sadd.s32 1, %s1256_s14   ;;  %s2147_s9 = smov %s1240_s10 }
 0x1a5   : > { %p16_p7 = scmp.ge.s32.totalorder %s19_s14, 4   ;;  %s2148_s10 = smov %s1244_s11 }
 0x1a6   : > { %s2149_s11 = smov %s1331_s22  ;;  %s2150_s12 = smov %s1252_s13 }
 0x1a7   : > { %s2151_s13 = smov %s2153_s17  ;;  %18 = sbr.rel (!%p16_p7) target bundleno = 6 (0x6), region = 80 }
 0x1ac   :  { %842 = vsyncpa [#allocation3], 1 }
 0x1ad   :  { %844 = vsyncpa [#allocation3 + $0x1], 1 }
 0x1ae   :  { %845 = vsyncpa [#allocation5], 1 }
 0x1af   :  { %847 = vsyncpa [#allocation5 + $0x1], 1 }

</bundles_post_ra>
